<compile_context>
chip_gen: v7x
topology: tpu7x:2x2x1
jax: 0.10.0
libtpu: 0.0.40
codegen_flags: <defaults>
</compile_context>

<pallas_src>
import jax
import jax.numpy as jnp
from jax.experimental import pallas as pl
from jax.experimental.pallas import tpu as pltpu

LANE = 128
BLOCK_ROWS_DEFAULT = 4096   # 4096*128*4B = 2 MiB per f32 input block
NUM_SPLITS_DEFAULT = 2      # one per TensorCore on v7x; harmless elsewhere


def _round_up(a, b):
    return ((a + b - 1) // b) * b


def _dice_partial_kernel(x_ref, t_ref, acc_ref):
    """Accumulate (sum(s*t), sum(s), sum(t)) into three (8,128) VMEM tiles.

    acc_ref block is (1, 3, 8, 128); it stays resident in VMEM across the
    inner ("arbitrary") grid axis because its block index only depends on the
    outer ("parallel") split axis.
    """
    i = pl.program_id(1)

    @pl.when(i == 0)
    def _():
        acc_ref[...] = jnp.zeros_like(acc_ref)

    x = x_ref[...].astype(jnp.float32)
    t = t_ref[...].astype(jnp.float32)
    s = jax.nn.sigmoid(x)

    # Tile-preserving reshape: (BR, 128) -> (BR//8, 8, 128); the reduction
    # over the leading axis lowers to plain VPU adds (no XLU in the hot loop).
    g = x.shape[0] // 8
    st3 = (s * t).reshape(g, 8, LANE)
    s3 = s.reshape(g, 8, LANE)
    t3 = t.reshape(g, 8, LANE)

    acc_ref[0, 0] += jnp.sum(st3, axis=0)
    acc_ref[0, 1] += jnp.sum(s3, axis=0)
    acc_ref[0, 2] += jnp.sum(t3, axis=0)


def dice_loss(inputs, targets, smooth=1.0,
              block_rows=BLOCK_ROWS_DEFAULT, num_splits=NUM_SPLITS_DEFAULT):
    """Pallas TPU implementation of DiceLoss.forward."""
    x = inputs.reshape(-1)
    t = targets.reshape(-1)
    n = x.shape[0]

    # Choose a block size: large for big tensors, clamped (multiple of 16 so
    # bf16 inputs are also tile-aligned) for small ones to avoid over-padding.
    rows_raw = -(-n // LANE)
    block_rows = max(16, min(block_rows, _round_up(rows_raw, 16)))

    blocks_raw = -(-rows_raw // block_rows)
    if blocks_raw < num_splits:
        num_splits = 1
    blocks = _round_up(blocks_raw, num_splits)
    rows = blocks * block_rows
    n_pad = rows * LANE
    pad = n_pad - n  # Python int: number of zero-padded elements.

    if pad:
        x = jnp.pad(x, (0, pad))
        t = jnp.pad(t, (0, pad))
    x2 = x.reshape(rows, LANE)
    t2 = t.reshape(rows, LANE)

    steps = blocks // num_splits
    grid = (num_splits, steps)

    in_spec = pl.BlockSpec((block_rows, LANE), lambda s, i: (s * steps + i, 0))
    out_spec = pl.BlockSpec((1, 3, 8, LANE), lambda s, i: (s, 0, 0, 0))

    partials = pl.pallas_call(
        _dice_partial_kernel,
        out_shape=jax.ShapeDtypeStruct((num_splits, 3, 8, LANE), jnp.float32),
        grid_spec=pltpu.PrefetchScalarGridSpec(
            num_scalar_prefetch=0,
            grid=grid,
            in_specs=[in_spec, in_spec],
            out_specs=out_spec,
        ),
        compiler_params=pltpu.CompilerParams(
            dimension_semantics=("parallel", "arbitrary")),
    )(x2, t2)

    # Tiny epilogue in plain JAX: combine per-split (8,128) partials and apply
    # the analytic pad correction (each padded element adds sigmoid(0)=0.5 to
    # sum(s); intersection and sum(t) are unaffected since padded t == 0).
    sums = jnp.sum(partials, axis=(0, 2, 3))          # (3,)
    inter = sums[0]
    s_sum = sums[1] - 0.5 * pad
    t_sum = sums[2]
    dice = (2.0 * inter + smooth) / (s_sum + t_sum + smooth)
    return 1.0 - dice


def dice_loss_ref(inputs, targets, smooth=1.0):
    """Pure-JAX reference (mirrors the PyTorch forward exactly)."""
    x = jax.nn.sigmoid(inputs.astype(jnp.float32)).reshape(-1)
    t = targets.astype(jnp.float32).reshape(-1)
    inter = jnp.sum(x * t)
    dice = (2.0 * inter + smooth) / (jnp.sum(x) + jnp.sum(t) + smooth)
    return 1.0 - dice


if __name__ == "__main__":
    key = jax.random.PRNGKey(0)
    k_in, k_tg = jax.random.split(key)

    # NCHW logits and binary targets, small shapes consistent with the module.
    inputs = jax.random.normal(k_in, (2, 4, 16, 16), dtype=jnp.float32)
    targets = (jax.random.uniform(k_tg, (2, 4, 16, 16)) > 0.5).astype(jnp.float32)

    loss = jax.block_until_ready(dice_loss(inputs, targets, smooth=1.0))
    ref = jax.block_until_ready(dice_loss_ref(inputs, targets, smooth=1.0))
    assert jnp.allclose(loss, ref, atol=1e-5, rtol=1e-5), (loss, ref)

    # Ragged shape exercises the analytic padding correction (n not a
    # multiple of 128).
    k_in2, k_tg2 = jax.random.split(k_tg)
    inputs2 = jax.random.normal(k_in2, (2, 3, 7, 11), dtype=jnp.float32)
    targets2 = (jax.random.uniform(k_tg2, (2, 3, 7, 11)) > 0.5).astype(jnp.float32)
    loss2 = jax.block_until_ready(dice_loss(inputs2, targets2, smooth=1.0))
    ref2 = jax.block_until_ready(dice_loss_ref(inputs2, targets2, smooth=1.0))
    assert jnp.allclose(loss2, ref2, atol=1e-5, rtol=1e-5), (loss2, ref2)

    print("KERNEL_OK")
</pallas_src>

<mosaic_0001>
module attributes {stable_mosaic.version = 11 : i64} {
  func.func @_dice_partial_kernel(%arg0: i32, %arg1: i32, %arg2: memref<16x128xf32, #tpu.memory_space<vmem>>, %arg3: memref<16x128xf32, #tpu.memory_space<vmem>>, %arg4: memref<1x3x8x128xf32, #tpu.memory_space<vmem>>) attributes {dimension_semantics = [#tpu.dimension_semantics<parallel>, #tpu.dimension_semantics<arbitrary>], iteration_bounds = array<i64: 1, 1>, scalar_prefetch = 0 : i64, scratch_operands = 0 : i64, tpu.core_type = #tpu.core_type<tc>, window_params = [{transform_indices = @transform_0, window_bounds = array<i64: 16, 128>}, {transform_indices = @transform_1, window_bounds = array<i64: 16, 128>}, {transform_indices = @transform_2, window_bounds = array<i64: 1, 3, 8, 128>}]} {
    %c0_i32 = arith.constant 0 : i32
    %0 = arith.cmpi eq, %arg1, %c0_i32 : i32
    %1 = arith.extui %0 : i1 to i32
    %c0_i32_0 = arith.constant 0 : i32
    %2 = arith.cmpi ne, %1, %c0_i32_0 : i32
    scf.if %2 {
      %cst_29 = arith.constant 0.000000e+00 : f32
      %35 = vector.broadcast %cst_29 : f32 to vector<1x3x8x128xf32>
      %c0_30 = arith.constant 0 : index
      %c0_31 = arith.constant 0 : index
      %c0_32 = arith.constant 0 : index
      %c0_33 = arith.constant 0 : index
      %36 = vector.load %arg4[%c0_30, %c0_31, %c0_32, %c0_33] : memref<1x3x8x128xf32, #tpu.memory_space<vmem>>, vector<1x3x8x128xf32>
      tpu.vector_store %arg4[%c0_30, %c0_31, %c0_32, %c0_33], %35 {strides = array<i32>} : memref<1x3x8x128xf32, #tpu.memory_space<vmem>>, vector<1x3x8x128xf32>,
    } else {
    }
    %c0 = arith.constant 0 : index
    %c0_1 = arith.constant 0 : index
    %3 = vector.load %arg2[%c0, %c0_1] : memref<16x128xf32, #tpu.memory_space<vmem>>, vector<16x128xf32>
    %c0_2 = arith.constant 0 : index
    %c0_3 = arith.constant 0 : index
    %4 = vector.load %arg3[%c0_2, %c0_3] : memref<16x128xf32, #tpu.memory_space<vmem>>, vector<16x128xf32>
    %5 = arith.negf %3 : vector<16x128xf32>
    %6 = math.exp %5 : vector<16x128xf32>
    %cst = arith.constant 1.000000e+00 : f32
    %7 = vector.broadcast %cst : f32 to vector<16x128xf32>
    %8 = arith.addf %7, %6 : vector<16x128xf32>
    %9 = arith.divf %7, %8 : vector<16x128xf32>
    %10 = arith.mulf %9, %4 : vector<16x128xf32>
    %11 = vector.shape_cast %10 : vector<16x128xf32> to vector<2x8x128xf32>
    %12 = vector.shape_cast %9 : vector<16x128xf32> to vector<2x8x128xf32>
    %13 = vector.shape_cast %4 : vector<16x128xf32> to vector<2x8x128xf32>
    %c0_4 = arith.constant 0 : index
    %c0_5 = arith.constant 0 : index
    %c0_6 = arith.constant 0 : index
    %c0_7 = arith.constant 0 : index
    %14 = vector.load %arg4[%c0_4, %c0_5, %c0_6, %c0_7] : memref<1x3x8x128xf32, #tpu.memory_space<vmem>>, vector<1x1x8x128xf32>
    %15 = vector.shape_cast %14 : vector<1x1x8x128xf32> to vector<8x128xf32>
    %cst_8 = arith.constant dense<0.000000e+00> : vector<8x128xf32>
    %16 = vector.multi_reduction <add>, %11, %cst_8 [0] : vector<2x8x128xf32> to vector<8x128xf32>
    %17 = arith.addf %15, %16 : vector<8x128xf32>
    %c0_9 = arith.constant 0 : index
    %c0_10 = arith.constant 0 : index
    %c0_11 = arith.constant 0 : index
    %c0_12 = arith.constant 0 : index
    %18 = vector.load %arg4[%c0_9, %c0_10, %c0_11, %c0_12] : memref<1x3x8x128xf32, #tpu.memory_space<vmem>>, vector<1x1x8x128xf32>
    %19 = vector.shape_cast %18 : vector<1x1x8x128xf32> to vector<8x128xf32>
    %20 = vector.shape_cast %17 : vector<8x128xf32> to vector<1x1x8x128xf32>
    tpu.vector_store %arg4[%c0_9, %c0_10, %c0_11, %c0_12], %20 {strides = array<i32>} : memref<1x3x8x128xf32, #tpu.memory_space<vmem>>, vector<1x1x8x128xf32>,
    %c0_13 = arith.constant 0 : index
    %c1 = arith.constant 1 : index
    %c0_14 = arith.constant 0 : index
    %c0_15 = arith.constant 0 : index
    %21 = vector.load %arg4[%c0_13, %c1, %c0_14, %c0_15] : memref<1x3x8x128xf32, #tpu.memory_space<vmem>>, vector<1x1x8x128xf32>
    %22 = vector.shape_cast %21 : vector<1x1x8x128xf32> to vector<8x128xf32>
    %cst_16 = arith.constant dense<0.000000e+00> : vector<8x128xf32>
    %23 = vector.multi_reduction <add>, %12, %cst_16 [0] : vector<2x8x128xf32> to vector<8x128xf32>
    %24 = arith.addf %22, %23 : vector<8x128xf32>
    %c0_17 = arith.constant 0 : index
    %c1_18 = arith.constant 1 : index
    %c0_19 = arith.constant 0 : index
    %c0_20 = arith.constant 0 : index
    %25 = vector.load %arg4[%c0_17, %c1_18, %c0_19, %c0_20] : memref<1x3x8x128xf32, #tpu.memory_space<vmem>>, vector<1x1x8x128xf32>
    %26 = vector.shape_cast %25 : vector<1x1x8x128xf32> to vector<8x128xf32>
    %27 = vector.shape_cast %24 : vector<8x128xf32> to vector<1x1x8x128xf32>
    tpu.vector_store %arg4[%c0_17, %c1_18, %c0_19, %c0_20], %27 {strides = array<i32>} : memref<1x3x8x128xf32, #tpu.memory_space<vmem>>, vector<1x1x8x128xf32>,
    %c0_21 = arith.constant 0 : index
    %c2 = arith.constant 2 : index
    %c0_22 = arith.constant 0 : index
    %c0_23 = arith.constant 0 : index
    %28 = vector.load %arg4[%c0_21, %c2, %c0_22, %c0_23] : memref<1x3x8x128xf32, #tpu.memory_space<vmem>>, vector<1x1x8x128xf32>
    %29 = vector.shape_cast %28 : vector<1x1x8x128xf32> to vector<8x128xf32>
    %cst_24 = arith.constant dense<0.000000e+00> : vector<8x128xf32>
    %30 = vector.multi_reduction <add>, %13, %cst_24 [0] : vector<2x8x128xf32> to vector<8x128xf32>
    %31 = arith.addf %29, %30 : vector<8x128xf32>
    %c0_25 = arith.constant 0 : index
    %c2_26 = arith.constant 2 : index
    %c0_27 = arith.constant 0 : index
    %c0_28 = arith.constant 0 : index
    %32 = vector.load %arg4[%c0_25, %c2_26, %c0_27, %c0_28] : memref<1x3x8x128xf32, #tpu.memory_space<vmem>>, vector<1x1x8x128xf32>
    %33 = vector.shape_cast %32 : vector<1x1x8x128xf32> to vector<8x128xf32>
    %34 = vector.shape_cast %31 : vector<8x128xf32> to vector<1x1x8x128xf32>
    tpu.vector_store %arg4[%c0_25, %c2_26, %c0_27, %c0_28], %34 {strides = array<i32>} : memref<1x3x8x128xf32, #tpu.memory_space<vmem>>, vector<1x1x8x128xf32>,
    return
  }
  func.func @transform_0(%arg0: i32, %arg1: i32) -> (i32, i32) {
    %c1_i32 = arith.constant 1 : i32
    %0 = arith.muli %arg0, %c1_i32 : i32
    %1 = arith.addi %0, %arg1 : i32
    %c0_i32 = arith.constant 0 : i32
    %c0_i32_0 = arith.constant 0 : i32
    return %1, %c0_i32 : i32, i32
  }
  func.func @transform_1(%arg0: i32, %arg1: i32) -> (i32, i32) {
    %c1_i32 = arith.constant 1 : i32
    %0 = arith.muli %arg0, %c1_i32 : i32
    %1 = arith.addi %0, %arg1 : i32
    %c0_i32 = arith.constant 0 : i32
    %c0_i32_0 = arith.constant 0 : i32
    return %1, %c0_i32 : i32, i32
  }
  func.func @transform_2(%arg0: i32, %arg1: i32) -> (i32, i32, i32, i32) {
    %c0_i32 = arith.constant 0 : i32
    %c0_i32_0 = arith.constant 0 : i32
    %c0_i32_1 = arith.constant 0 : i32
    %c0_i32_2 = arith.constant 0 : i32
    return %arg0, %c0_i32, %c0_i32_0, %c0_i32_1 : i32, i32, i32, i32
  }
}

</mosaic_0001>

<bundles_post_ra>
// kernel: tpu_custom_call.1
= control target key start
LH: loop header
LB: loop body
LE: loop exit
PB: predicated region body
PF: predicated region fallthrough
CT: control target
= control target key end

     0   :  { %7 = vsyncpa [#allocation3], 0  ;;  %s262_s0 = inlined_call_operand.hbm [shape: f32[16,128], index: 0, kind: input, shape index: {}]   ;;  %s263_s1 = inlined_call_operand.hbm [shape: f32[16,128], index: 1, kind: input, shape index: {}]   ;;  %s264_s2 = inlined_call_operand.hbm [shape: f32[1,3,8,128], index: 2, kind: output, shape index: {}]  }
   0x1   :  { %8 = vsyncpa [#allocation6], 0 }
   0x2   :  { %9 = vsyncpa [#allocation4], 0  ;;  %s197_s9 = smov [#allocation2]   ;;  %s125_s13 = scalar_lea.hbm %s262_s0, 256 }
   0x3   :  { %s19_s10 = sshll.u32 %s197_s9, 4  ;;  %p126_p0 = scmp.ne.s32.totalorder %s262_s0, %s125_s13  ;;  %s20_s10 = int_to_ptr.vmem [resolvable:$true] %s19_s10 }
   0x4   :  { %p129_p1 = scmp.lt.u32.totalorder %s125_s13, %s262_s0 }
   0x6   :  { %p131_p2 = pnand %p129_p1, %p126_p0 }
   0x8   :  { %134 = shalt.err (!%p131_p2)
}
   0x9   :  { %s135_s18 = scalar_lea.vmem %s20_s10, 256  ;;  %p140_p4 = scmp.lt.s32.totalorder %s20_s10, %s20_s10 }
   0xa   :  { %p136_p3 = scmp.ne.s32.totalorder %s20_s10, %s135_s18  ;;  %p141_p5 = scmp.lt.s32.totalorder %s135_s18, %s135_s18 }
   0xc   :  { %p142_p6 = por %p141_p5, %p140_p4 }
   0xe   :  { %p143_p7 = pnand %p142_p6, %p136_p3 }
  0x10   :  { %146 = shalt.err (!%p143_p7)
}
  0x11   :  { %s198_s19 = smov 128   ;;  %s199_s20 = smov 8  }
  0x12   :  { %25 = dma.hbm_to_vmem [thread:$0]  %s262_s0, 256, %s20_s10, [#allocation3], %s198_s19, %s198_s19, %s199_s20  }
  0x13   :  { %s200_s23 = smov [#allocation5]   ;;  %s147_s27 = scalar_lea.hbm %s263_s1, 256 }
  0x14   :  { %s35_s24 = sshll.u32 %s200_s23, 4  ;;  %p148_p8 = scmp.ne.s32.totalorder %s263_s1, %s147_s27  ;;  %s36_s24 = int_to_ptr.vmem [resolvable:$true] %s35_s24 }
  0x15   :  { %p151_p9 = scmp.lt.u32.totalorder %s147_s27, %s263_s1 }
  0x17   :  { %p153_p10 = pnand %p151_p9, %p148_p8 }
  0x19   :  { %156 = shalt.err (!%p153_p10)
}
  0x1a   :  { %s157_s4 = scalar_lea.vmem %s36_s24, 256  ;;  %p162_p12 = scmp.lt.s32.totalorder %s36_s24, %s36_s24 }
  0x1b   :  { %p158_p11 = scmp.ne.s32.totalorder %s36_s24, %s157_s4  ;;  %p163_p13 = scmp.lt.s32.totalorder %s157_s4, %s157_s4 }
  0x1d   :  { %p164_p0 = por %p163_p13, %p162_p12 }
  0x1f   :  { %p165_p1 = pnand %p164_p0, %p158_p11 }
  0x21   :  { %168 = shalt.err (!%p165_p1)
}
  0x22   :  { %41 = dma.hbm_to_vmem [thread:$0]  %s263_s1, 256, %s36_s24, [#allocation6], %s198_s19, %s198_s19, %s199_s20  }
  0x23   :  { %191 = dma.done.wait [#allocation3], 256  }
  0x24   :  { %192 = vsyncadd [#allocation3], 4294967040 }
  0x25   :  { %193 = dma.done.wait [#allocation6], 256  }
  0x26   :  { %194 = vsyncadd [#allocation6], 4294967040  ;;  %v59_v0 = vld [vmem:[#allocation2] sm:$0xff]  ;;  %v60_v1 = vld [vmem:[#allocation2 + $0x8] sm:$0xff]  ;;  %s201_s1 = smov [#allocation7]  }
  0x27   :  { %v61_v2 = vld [vmem:[#allocation5] sm:$0xff]  ;;  %v62_v3 = vld [vmem:[#allocation5 + $0x8] sm:$0xff]  ;;  %v109_v4 = vmul.f32 -1.442695, %v59_v0  ;;  %v110_v5 = vmul.f32 -1.442695, %v60_v1 }
  0x28   :  { %v88_v6 = vadd.f32 %v62_v3, %v61_v2  ;;  %s96_s6 = sshll.u32 %s201_s1, 4  ;;  %s97_s6 = int_to_ptr.vmem [resolvable:$true] %s96_s6 }
  0x29   :  { %117 = vpow2.f32 %v109_v4  ;;  %s169_s7 = scalar_lea.vmem %s97_s6, 384  ;;  %p174_p3 = scmp.lt.s32.totalorder %s97_s6, %s97_s6 }
  0x2a   :  { %119 = vpow2.f32 %v110_v5  ;;  %90 = vst [vmem:[#allocation7 + $0x10] sm:$0xff] %v88_v6  ;;  %p170_p2 = scmp.ne.s32.totalorder %s97_s6, %s169_s7  ;;  %p175_p4 = scmp.lt.s32.totalorder %s169_s7, %s169_s7 }
  0x2c   :  { %p176_p5 = por %p175_p4, %p174_p3 }
  0x2e   :  { %p177_p6 = pnand %p176_p5, %p170_p2 }
  0x33   :  { %v118_v7 = vpop.eup %117 }
  0x34   :  { %v120_v8 = vpop.eup %119  ;;  %v69_v9 = vadd.f32 1.0, %v118_v7 }
  0x35   :  { %v70_v10 = vadd.f32 1.0, %v120_v8 }
  0x36   :  { %121 = vrcp.f32 %v69_v9 }
  0x37   :  { %123 = vrcp.f32 %v70_v10 }
  0x40   :  { %v122_v11 = vpop.eup %121 }
  0x41   :  { %v124_v12 = vpop.eup %123  ;;  %v75_v13 = vmul.f32 %v122_v11, %v61_v2 }
  0x42   :  { %v76_v14 = vmul.f32 %v124_v12, %v62_v3  ;;  %v83_v15 = vadd.f32 %v124_v12, %v122_v11 }
  0x44   :  { %v78_v16 = vadd.f32 %v76_v14, %v75_v13  ;;  %85 = vst [vmem:[#allocation7 + $0x8] sm:$0xff] %v83_v15 }
  0x46   :  { %80 = vst [vmem:[#allocation7] sm:$0xff] %v78_v16 }
  0x47   :  { %180 = shalt.err (!%p177_p6)
}
  0x48   :  { %s181_s10 = scalar_lea.hbm %s264_s2, 384 }
  0x49   :  { %p182_p7 = scmp.ne.s32.totalorder %s264_s2, %s181_s10  ;;  %p185_p8 = scmp.lt.u32.totalorder %s181_s10, %s264_s2 }
  0x4b   :  { %p187_p9 = pnand %p185_p8, %p182_p7 }
  0x4d   :  { %190 = shalt.err (!%p187_p9)
}
  0x4e   :  { %102 = dma.vmem_to_hbm [thread:$0]  %s97_s6, 384, %s264_s2, [#allocation4], %s198_s19, %s198_s19, %s199_s20  }
  0x4f   :  { %195 = dma.done.wait [#allocation4], 384  }
  0x50   :  { %196 = vsyncadd [#allocation4], 4294966912 }
  0x51   :  { %106 = vsyncpa [#allocation3], 1 }
  0x52   :  { %107 = vsyncpa [#allocation6], 1 }
  0x53   :  { %108 = vsyncpa [#allocation4], 1 }

</bundles_post_ra>
